<compile_context>
chip_gen: v7x
topology: tpu7x:2x2x1
jax: 0.10.0
libtpu: 0.0.40
codegen_flags: <defaults>
</compile_context>

<pallas_src>
import functools

import jax
import jax.numpy as jnp
from jax.experimental import pallas as pl
from jax.experimental.pallas import tpu as pltpu


_LANE_CANDIDATES = (1024, 512, 256, 128)
_TARGET_BLOCK_BYTES = 2 * 1024 * 1024  # ~2 MiB blocks: roofline-friendly on all gens


def _identity_kernel(x_ref, o_ref):
    # Full-tile VMEM load + store (identity copy).
    o_ref[...] = x_ref[...]


def _sublane_multiple(dtype) -> int:
    itemsize = jnp.dtype(dtype).itemsize
    if itemsize >= 4:
        return 8
    if itemsize == 2:
        return 16
    return 32


def _plan_layout(total: int, dtype):
    """Pick (rows, cols, tile_rows, pad) for a 2D lane-dense layout."""
    itemsize = jnp.dtype(dtype).itemsize
    sub = _sublane_multiple(dtype)

    cols = None
    for c in _LANE_CANDIDATES:
        if total % (c * sub) == 0:
            cols = c
            break

    if cols is None:
        # Rare path: pad to the minimal (sub x 128) granule.
        cols = 128
        granule = cols * sub
        padded = pl.cdiv(total, granule) * granule
    else:
        padded = total

    rows = padded // cols

    # Largest tile (multiple of `sub` rows) whose block is <= target bytes.
    rows_for_target = max(sub, _TARGET_BLOCK_BYTES // (cols * itemsize))
    tile_rows = min(rows, (rows_for_target // sub) * sub)
    tile_rows = max(tile_rows, sub)

    return rows, cols, tile_rows, padded - total


@functools.partial(jax.jit, static_argnames=("donate",))
def input_map_out(x: jax.Array, *, donate: bool = False) -> jax.Array:
    """Identity forward pass of `inputMapOut`, executed as a Pallas TPU kernel."""
    if x.size == 0:
        return x

    orig_shape = x.shape
    total = x.size
    rows, cols, tile_rows, pad = _plan_layout(total, x.dtype)

    x_flat = jnp.reshape(x, (total,))
    if pad:
        x_flat = jnp.pad(x_flat, (0, pad))
    x2d = jnp.reshape(x_flat, (rows, cols))

    grid = (pl.cdiv(rows, tile_rows),)

    out2d = pl.pallas_call(
        _identity_kernel,
        out_shape=jax.ShapeDtypeStruct((rows, cols), x.dtype),
        grid_spec=pltpu.PrefetchScalarGridSpec(
            num_scalar_prefetch=0,
            grid=grid,
            in_specs=[pl.BlockSpec((tile_rows, cols), lambda i: (i, 0))],
            out_specs=pl.BlockSpec((tile_rows, cols), lambda i: (i, 0)),
        ),
        compiler_params=pltpu.CompilerParams(
            dimension_semantics=("parallel",),
        ),
        input_output_aliases=({0: 0} if donate else {}),
    )(x2d)

    if pad:
        out_flat = jnp.reshape(out2d, (total + pad,))[:total]
    else:
        out_flat = jnp.reshape(out2d, (total,))
    return jnp.reshape(out_flat, orig_shape)


if __name__ == "__main__":
    key = jax.random.PRNGKey(0)
    # Small NCHW input consistent with a feature map fed into the module.
    x = jax.random.normal(key, (2, 4, 16, 16), dtype=jnp.float32)

    y = input_map_out(x)
    y = jax.block_until_ready(y)

    assert y.shape == x.shape and y.dtype == x.dtype
    assert bool(jnp.all(y == x))
    print("KERNEL_OK")
</pallas_src>

<mosaic_0001>
module attributes {stable_mosaic.version = 11 : i64} {
  func.func @_identity_kernel(%arg0: i32, %arg1: memref<8x256xf32, #tpu.memory_space<vmem>>, %arg2: memref<8x256xf32, #tpu.memory_space<vmem>>) attributes {dimension_semantics = [#tpu.dimension_semantics<parallel>], iteration_bounds = array<i64: 1>, scalar_prefetch = 0 : i64, scratch_operands = 0 : i64, tpu.core_type = #tpu.core_type<tc>, window_params = [{transform_indices = @transform_0, window_bounds = array<i64: 8, 256>}, {transform_indices = @transform_1, window_bounds = array<i64: 8, 256>}]} {
    %c0 = arith.constant 0 : index
    %c0_0 = arith.constant 0 : index
    %0 = vector.load %arg1[%c0, %c0_0] : memref<8x256xf32, #tpu.memory_space<vmem>>, vector<8x256xf32>
    %c0_1 = arith.constant 0 : index
    %c0_2 = arith.constant 0 : index
    %1 = vector.load %arg2[%c0_1, %c0_2] : memref<8x256xf32, #tpu.memory_space<vmem>>, vector<8x256xf32>
    tpu.vector_store %arg2[%c0_1, %c0_2], %0 {strides = array<i32>} : memref<8x256xf32, #tpu.memory_space<vmem>>, vector<8x256xf32>,
    return
  }
  func.func @transform_0(%arg0: i32) -> (i32, i32) {
    %c0_i32 = arith.constant 0 : i32
    %c0_i32_0 = arith.constant 0 : i32
    return %arg0, %c0_i32 : i32, i32
  }
  func.func @transform_1(%arg0: i32) -> (i32, i32) {
    %c0_i32 = arith.constant 0 : i32
    %c0_i32_0 = arith.constant 0 : i32
    return %arg0, %c0_i32 : i32, i32
  }
}

</mosaic_0001>

<bundles_post_ra>
// kernel: input_map_out.1
= control target key start
LH: loop header
LB: loop body
LE: loop exit
PB: predicated region body
PF: predicated region fallthrough
CT: control target
= control target key end

     0   :  { %s38_s0 = inlined_call_operand.vmem [shape: f32[8,256], index: 0, kind: input, shape index: {}]   ;;  %s39_s1 = inlined_call_operand.vmem [shape: f32[8,256], index: 1, kind: output, shape index: {}]  }
   0x1   :  { %v8_v0 = vld [vmem:[%s38_s0] sm:$0xff]  ;;  %v9_v1 = vld [vmem:[%s38_s0 + $0x8] sm:$0xff] }
   0x2   :  { %10 = vst [vmem:[%s39_s1] sm:$0xff] %v8_v0  ;;  %11 = vst [vmem:[%s39_s1 + $0x8] sm:$0xff] %v9_v1 }

</bundles_post_ra>
